<compile_context>
chip_gen: v5e
topology: v5e:2x2
jax: 0.10.0
libtpu: 0.0.40
codegen_flags: <defaults>
</compile_context>

<pallas_src>
import math

import jax
import jax.numpy as jnp
from jax.experimental import pallas as pl
from jax.experimental.pallas import tpu as pltpu


def _rup(x: int, m: int) -> int:
    return ((x + m - 1) // m) * m


# Tile caps (sized so bf16 A/B double-buffers + f32 out stay well under the 64 MiB
# v7x VMEM while still giving full-width MXU pushes on v6e).
TM, TN, TK = 512, 256, 256


def _pad_dim(d: int, base: int, tile: int):
    """Pad dim `d` up to a TPU-friendly size; return (padded, tile)."""
    p = _rup(max(d, base), base)
    if p <= tile:
        return p, p
    return _rup(d, tile), tile


# ----------------------------------------------------------------------------
# Pallas matmul kernel:  out = relu?(A @ B + bias), bf16 operands, f32 accumulate
# ----------------------------------------------------------------------------
def _mm_kernel_factory(relu: bool):
    def kernel(a_ref, b_ref, bias_ref, o_ref):
        k = pl.program_id(2)

        @pl.when(k == 0)
        def _():
            o_ref[...] = jnp.zeros_like(o_ref)

        o_ref[...] += jnp.dot(a_ref[...], b_ref[...],
                              preferred_element_type=jnp.float32)

        @pl.when(k == pl.num_programs(2) - 1)
        def _():
            r = o_ref[...] + bias_ref[...]
            if relu:
                r = jnp.maximum(r, 0.0)
            o_ref[...] = r

    return kernel


def prep_linear(w, b):
    """Pad (once, at init) a [K, N] weight / [N] bias to TPU tile boundaries (bf16/f32)."""
    K, N = w.shape
    Kp, tk = _pad_dim(K, 128, TK)
    Np, tn = _pad_dim(N, 128, TN)
    w_p = jnp.zeros((Kp, Np), jnp.bfloat16).at[:K, :N].set(w.astype(jnp.bfloat16))
    b_p = jnp.zeros((1, Np), jnp.float32).at[0, :N].set(b.astype(jnp.float32))
    return {"w": w_p, "b": b_p, "K": K, "N": N, "tk": tk, "tn": tn}


def pallas_matmul(a, lin, relu=False):
    """a: [M, K] (any float), lin: prep_linear(...) -> [M, N] float32."""
    M, K = a.shape
    assert K == lin["K"]
    Kp, Np = lin["w"].shape
    tk, tn = lin["tk"], lin["tn"]
    Mp, tm = _pad_dim(M, 8, TM)

    a_p = jnp.zeros((Mp, Kp), jnp.bfloat16).at[:M, :K].set(a.astype(jnp.bfloat16))

    out = pl.pallas_call(
        _mm_kernel_factory(relu),
        out_shape=jax.ShapeDtypeStruct((Mp, Np), jnp.float32),
        grid_spec=pltpu.PrefetchScalarGridSpec(
            num_scalar_prefetch=0,
            grid=(Mp // tm, Np // tn, Kp // tk),
            in_specs=[
                pl.BlockSpec((tm, tk), lambda i, j, k: (i, k)),
                pl.BlockSpec((tk, tn), lambda i, j, k: (k, j)),
                pl.BlockSpec((1, tn), lambda i, j, k: (0, j)),
            ],
            out_specs=pl.BlockSpec((tm, tn), lambda i, j, k: (i, j)),
        ),
        compiler_params=pltpu.CompilerParams(
            dimension_semantics=("parallel", "parallel", "arbitrary")),
    )(a_p, lin["w"], lin["b"])
    return out[:M, :lin["N"]]


# ----------------------------------------------------------------------------
# Pallas box-decode kernel (Faster R-CNN box coder, elementwise)
# rows 0..3 of the [8, Mp] operands carry x1/y1/x2/y2 (resp. dx/dy/dw/dh)
# ----------------------------------------------------------------------------
BBOX_XFORM_CLIP = math.log(1000.0 / 16.0)


def _decode_kernel_factory(img_w, img_h, wx, wy, ww, wh):
    def kernel(anch_ref, delt_ref, out_ref):
        a = anch_ref[...]
        d = delt_ref[...]
        x1, y1, x2, y2 = a[0:1, :], a[1:2, :], a[2:3, :], a[3:4, :]
        dx = d[0:1, :] * (1.0 / wx)
        dy = d[1:2, :] * (1.0 / wy)
        dw = jnp.minimum(d[2:3, :] * (1.0 / ww), BBOX_XFORM_CLIP)
        dh = jnp.minimum(d[3:4, :] * (1.0 / wh), BBOX_XFORM_CLIP)
        w = x2 - x1
        h = y2 - y1
        cx = x1 + 0.5 * w
        cy = y1 + 0.5 * h
        pcx = dx * w + cx
        pcy = dy * h + cy
        pw = jnp.exp(dw) * w
        ph = jnp.exp(dh) * h
        # Row-wise lane-dense stores (no concat temporary).
        out_ref[0:1, :] = jnp.clip(pcx - 0.5 * pw, 0.0, img_w)
        out_ref[1:2, :] = jnp.clip(pcy - 0.5 * ph, 0.0, img_h)
        out_ref[2:3, :] = jnp.clip(pcx + 0.5 * pw, 0.0, img_w)
        out_ref[3:4, :] = jnp.clip(pcy + 0.5 * ph, 0.0, img_h)
        out_ref[4:8, :] = jnp.zeros((4, a.shape[1]), jnp.float32)

    return kernel


def pallas_box_decode(boxes, deltas, img_w, img_h, weights=(1.0, 1.0, 1.0, 1.0)):
    """boxes, deltas: [M, 4] -> decoded + clipped boxes [M, 4]."""
    M = boxes.shape[0]
    Mp = _rup(max(M, 128), 128)
    tile = min(512, Mp)
    if Mp % tile:
        Mp = _rup(Mp, tile)
    a = jnp.zeros((8, Mp), jnp.float32).at[0:4, :M].set(boxes.T.astype(jnp.float32))
    d = jnp.zeros((8, Mp), jnp.float32).at[0:4, :M].set(deltas.T.astype(jnp.float32))
    out = pl.pallas_call(
        _decode_kernel_factory(float(img_w), float(img_h),
                               float(weights[0]), float(weights[1]),
                               float(weights[2]), float(weights[3])),
        out_shape=jax.ShapeDtypeStruct((8, Mp), jnp.float32),
        grid=(Mp // tile,),
        in_specs=[
            pl.BlockSpec((8, tile), lambda i: (0, i)),
            pl.BlockSpec((8, tile), lambda i: (0, i)),
        ],
        out_specs=pl.BlockSpec((8, tile), lambda i: (0, i)),
        compiler_params=pltpu.CompilerParams(dimension_semantics=("parallel",)),
    )(a, d)
    return out[0:4, :M].T


# ----------------------------------------------------------------------------
# Convolution via im2col + Pallas matmul (NHWC)
# ----------------------------------------------------------------------------
def _im2col(x, kh, kw, stride, pad):
    # TODO(synk): fuse patch extraction into the matmul kernel (halo-block DMA) to
    # avoid the HBM-materialized 9x-amplified patch tensor at real feature-map sizes.
    N, H, W, C = x.shape
    xp = jnp.pad(x, ((0, 0), (pad, pad), (pad, pad), (0, 0)))
    Ho = (H + 2 * pad - kh) // stride + 1
    Wo = (W + 2 * pad - kw) // stride + 1
    cols = []
    for i in range(kh):
        for j in range(kw):
            cols.append(xp[:, i:i + Ho * stride:stride, j:j + Wo * stride:stride, :])
    patches = jnp.concatenate(cols, axis=-1)        # [N, Ho, Wo, kh*kw*C]
    return patches.reshape(N * Ho * Wo, kh * kw * C), (N, Ho, Wo)


def conv2d(x, lin, kh, kw, stride, pad, relu=True):
    """x: [N,H,W,Cin], lin: prep_linear([kh*kw*Cin, Cout]) -> [N,Ho,Wo,Cout]."""
    patches, (N, Ho, Wo) = _im2col(x, kh, kw, stride, pad)
    out = pallas_matmul(patches, lin, relu=relu)
    return out.reshape(N, Ho, Wo, -1)


# ----------------------------------------------------------------------------
# Glue: anchors, RoI pooling (nearest-neighbor sampling)
# ----------------------------------------------------------------------------
def make_anchors(Hf, Wf, stride, sizes):
    ys = (jnp.arange(Hf, dtype=jnp.float32) + 0.5) * stride
    xs = (jnp.arange(Wf, dtype=jnp.float32) + 0.5) * stride
    cy, cx = jnp.meshgrid(ys, xs, indexing="ij")
    per_size = []
    for s in sizes:
        per_size.append(jnp.stack([cx - s / 2, cy - s / 2, cx + s / 2, cy + s / 2],
                                  axis=-1))
    a = jnp.stack(per_size, axis=2)                 # [Hf, Wf, A, 4]
    return a.reshape(-1, 4)


def roi_pool(feat, boxes, stride, out_size):
    """feat: [Hf, Wf, C], boxes: [R, 4] (image coords) -> [R, out, out, C]."""
    Hf, Wf, C = feat.shape

    def one(box):
        fx1, fy1, fx2, fy2 = box[0] / stride, box[1] / stride, box[2] / stride, box[3] / stride
        grid = (jnp.arange(out_size, dtype=jnp.float32) + 0.5) / out_size
        xs = fx1 + (fx2 - fx1) * grid
        ys = fy1 + (fy2 - fy1) * grid
        xi = jnp.clip(jnp.floor(xs).astype(jnp.int32), 0, Wf - 1)
        yi = jnp.clip(jnp.floor(ys).astype(jnp.int32), 0, Hf - 1)
        return feat[yi][:, xi]                      # [out, out, C]

    # TODO(synk): true RoIAlign bilinear sampling (sampling_ratio=2) needs a
    # data-dependent DMA gather kernel; kept as plain-JAX nearest-neighbor gather.
    return jax.vmap(one)(boxes)


# ----------------------------------------------------------------------------
# Parameters (deterministic synthetic init; weights padded/bf16-cast once here)
# ----------------------------------------------------------------------------
def init_params(key, nclasses=2, num_anchors=3):
    ks = jax.random.split(key, 16)

    def lin(k, fan_in, fan_out):
        w = jax.random.normal(k, (fan_in, fan_out), jnp.float32) / jnp.sqrt(float(fan_in))
        b = jnp.zeros((fan_out,), jnp.float32)
        return w, b

    c1w, c1b = lin(ks[0], 3 * 3 * 3, 16)
    c2w, c2b = lin(ks[1], 3 * 3 * 16, 32)
    rcw, rcb = lin(ks[2], 3 * 3 * 32, 32)
    rclsw, rclsb = lin(ks[3], 32, num_anchors)            # RPN objectness
    rbw, rbb = lin(ks[4], 32, num_anchors * 4)            # RPN bbox deltas
    f6w, f6b = lin(ks[5], 32 * 4 * 4, 64)
    f7w, f7b = lin(ks[6], 64, 64)
    clw, clb = lin(ks[7], 64, nclasses)                   # FastRCNNPredictor.cls_score
    bw, bb = lin(ks[8], 64, nclasses * 4)                 # FastRCNNPredictor.bbox_pred

    p = {}
    p["conv1"] = prep_linear(c1w, c1b)
    p["conv2"] = prep_linear(c2w, c2b)
    p["rpn_conv"] = prep_linear(rcw, rcb)
    # fused RPN head: columns [0:A] = objectness, [A:5A] = bbox deltas
    p["rpn_head"] = prep_linear(jnp.concatenate([rclsw, rbw], axis=1),
                                jnp.concatenate([rclsb, rbb], axis=0))
    p["fc6"] = prep_linear(f6w, f6b)
    p["fc7"] = prep_linear(f7w, f7b)
    # fused box head: columns [0:nc] = class logits, [nc:5nc] = box regression
    p["box_head"] = prep_linear(jnp.concatenate([clw, bw], axis=1),
                                jnp.concatenate([clb, bb], axis=0))
    return p


# ----------------------------------------------------------------------------
# Forward pass
# ----------------------------------------------------------------------------
def faster_rcnn_forward(x_nchw, params, num_anchors=3, topk=16, nclasses=2):
    # TODO(synk): GeneralizedRCNNTransform (resize + ImageNet mean/std normalization) omitted.
    x = jnp.transpose(x_nchw, (0, 2, 3, 1)).astype(jnp.float32)   # NCHW -> NHWC
    N, H, W, _ = x.shape

    # backbone (tiny stand-in for ResNet50+FPN)
    f1 = conv2d(x, params["conv1"], 3, 3, 2, 1, relu=True)
    f2 = conv2d(f1, params["conv2"], 3, 3, 2, 1, relu=True)
    Hf, Wf, C = f2.shape[1], f2.shape[2], f2.shape[3]
    stride = H // Hf

    # RPN head (fused objectness + bbox matmul)
    t = conv2d(f2, params["rpn_conv"], 3, 3, 1, 1, relu=True)
    tf = t.reshape(N * Hf * Wf, C)
    A = num_anchors
    rpn_out = pallas_matmul(tf, params["rpn_head"])                # [N*Hf*Wf, 5A]
    obj_logits = rpn_out[:, :A].reshape(N, Hf * Wf * A)
    rpn_deltas = rpn_out[:, A:5 * A].reshape(N, Hf * Wf * A, 4)

    anchors = make_anchors(Hf, Wf, stride, (8.0, 16.0, 24.0))      # [A_tot, 4]
    anchors_all = jnp.tile(anchors, (N, 1))                        # [N*A_tot, 4]
    proposals = pallas_box_decode(anchors_all, rpn_deltas.reshape(-1, 4), W, H)
    proposals = proposals.reshape(N, -1, 4)

    obj_scores = jax.nn.sigmoid(obj_logits)
    _, top_idx = jax.lax.top_k(obj_scores, topk)
    props = jnp.take_along_axis(proposals, top_idx[..., None], axis=1)   # [N, K, 4]
    # TODO(synk): RPN NMS (sequential suppression) omitted — no clean Pallas equivalent.

    # RoI heads
    pooled = jax.vmap(lambda f, b: roi_pool(f, b, stride, 4))(f2, props)  # [N,K,4,4,C]
    feats = pooled.reshape(N * topk, -1)                                  # [R, 512]
    h6 = pallas_matmul(feats, params["fc6"], relu=True)
    h7 = pallas_matmul(h6, params["fc7"], relu=True)
    head_out = pallas_matmul(h7, params["box_head"])               # [R, nclasses*5]
    cls_logits = head_out[:, :nclasses]
    box_regr = head_out[:, nclasses:nclasses + nclasses * 4]

    probs = jax.nn.softmax(cls_logits, axis=-1)
    scores = probs[:, 1]                                  # foreground class (nclasses=2)
    fg_deltas = box_regr[:, 4:8]
    boxes = pallas_box_decode(props.reshape(-1, 4), fg_deltas, W, H,
                              weights=(10.0, 10.0, 5.0, 5.0))      # torchvision box coder wts
    labels = jnp.ones((N * topk,), jnp.int32)             # Int64 in torch; int32 under JAX default
    # TODO(synk): score thresholding + per-class NMS of final detections omitted.
    return boxes, labels, scores


if __name__ == "__main__":
    key = jax.random.PRNGKey(0)
    k_img, k_par = jax.random.split(key)
    x = jax.random.normal(k_img, (2, 3, 32, 32), jnp.float32)   # NCHW, like PyTorch
    params = init_params(k_par, nclasses=2)

    boxes, labels, scores = faster_rcnn_forward(x, params)
    jax.block_until_ready((boxes, labels, scores))
    assert boxes.shape == (32, 4) and labels.shape == (32,) and scores.shape == (32,)
    print("KERNEL_OK")
</pallas_src>

<mosaic_0001>
module attributes {stable_mosaic.version = 11 : i64} {
  func.func @kernel(%arg0: i32, %arg1: i32, %arg2: i32, %arg3: memref<512x128xbf16, #tpu.memory_space<vmem>>, %arg4: memref<128x128xbf16, #tpu.memory_space<vmem>>, %arg5: memref<1x128xf32, #tpu.memory_space<vmem>>, %arg6: memref<512x128xf32, #tpu.memory_space<vmem>>) attributes {dimension_semantics = [#tpu.dimension_semantics<parallel>, #tpu.dimension_semantics<parallel>, #tpu.dimension_semantics<arbitrary>], iteration_bounds = array<i64: 1, 1, 1>, scalar_prefetch = 0 : i64, scratch_operands = 0 : i64, tpu.core_type = #tpu.core_type<tc>, window_params = [{transform_indices = @transform_0, window_bounds = array<i64: 512, 128>}, {transform_indices = @transform_1, window_bounds = array<i64: 128, 128>}, {transform_indices = @transform_2, window_bounds = array<i64: 1, 128>}, {transform_indices = @transform_3, window_bounds = array<i64: 512, 128>}]} {
    %c0_i32 = arith.constant 0 : i32
    %0 = arith.cmpi eq, %arg2, %c0_i32 : i32
    %1 = arith.extui %0 : i1 to i32
    %c0_i32_0 = arith.constant 0 : i32
    %2 = arith.cmpi ne, %1, %c0_i32_0 : i32
    scf.if %2 {
      %cst_10 = arith.constant 0.000000e+00 : f32
      %12 = vector.broadcast %cst_10 : f32 to vector<512x128xf32>
      %c0_11 = arith.constant 0 : index
      %c0_12 = arith.constant 0 : index
      %13 = vector.load %arg6[%c0_11, %c0_12] : memref<512x128xf32, #tpu.memory_space<vmem>>, vector<512x128xf32>
      tpu.vector_store %arg6[%c0_11, %c0_12], %12 {strides = array<i32>} : memref<512x128xf32, #tpu.memory_space<vmem>>, vector<512x128xf32>,
    } else {
    }
    %c0 = arith.constant 0 : index
    %c0_1 = arith.constant 0 : index
    %3 = vector.load %arg6[%c0, %c0_1] : memref<512x128xf32, #tpu.memory_space<vmem>>, vector<512x128xf32>
    %c0_2 = arith.constant 0 : index
    %c0_3 = arith.constant 0 : index
    %4 = vector.load %arg3[%c0_2, %c0_3] : memref<512x128xbf16, #tpu.memory_space<vmem>>, vector<512x128xbf16>
    %c0_4 = arith.constant 0 : index
    %c0_5 = arith.constant 0 : index
    %5 = vector.load %arg4[%c0_4, %c0_5] : memref<128x128xbf16, #tpu.memory_space<vmem>>, vector<128x128xbf16>
    %cst = arith.constant dense<0.000000e+00> : vector<512x128xf32>
    %6 = tpu.matmul %4, %5, %cst {dimension_numbers = #tpu.dot_dimension_numbers<[1], [0], [0], [1], [0, 0, 1, 1], [], []>} : vector<512x128xbf16>, vector<128x128xbf16>, vector<512x128xf32> -> vector<512x128xf32>
    %7 = arith.addf %3, %6 : vector<512x128xf32>
    %c0_6 = arith.constant 0 : index
    %c0_7 = arith.constant 0 : index
    %8 = vector.load %arg6[%c0_6, %c0_7] : memref<512x128xf32, #tpu.memory_space<vmem>>, vector<512x128xf32>
    tpu.vector_store %arg6[%c0_6, %c0_7], %7 {strides = array<i32>} : memref<512x128xf32, #tpu.memory_space<vmem>>, vector<512x128xf32>,
    %c0_i32_8 = arith.constant 0 : i32
    %9 = arith.cmpi eq, %arg2, %c0_i32_8 : i32
    %10 = arith.extui %9 : i1 to i32
    %c0_i32_9 = arith.constant 0 : i32
    %11 = arith.cmpi ne, %10, %c0_i32_9 : i32
    scf.if %11 {
      %c0_10 = arith.constant 0 : index
      %c0_11 = arith.constant 0 : index
      %12 = vector.load %arg6[%c0_10, %c0_11] : memref<512x128xf32, #tpu.memory_space<vmem>>, vector<512x128xf32>
      %c0_12 = arith.constant 0 : index
      %c0_13 = arith.constant 0 : index
      %13 = vector.load %arg5[%c0_12, %c0_13] : memref<1x128xf32, #tpu.memory_space<vmem>>, vector<1x128xf32>
      %14 = vector.broadcast %13 : vector<1x128xf32> to vector<512x128xf32>
      %15 = arith.addf %12, %14 : vector<512x128xf32>
      %cst_14 = arith.constant 0.000000e+00 : f32
      %16 = vector.broadcast %cst_14 : f32 to vector<512x128xf32>
      %17 = arith.maximumf %15, %16 : vector<512x128xf32>
      %c0_15 = arith.constant 0 : index
      %c0_16 = arith.constant 0 : index
      %18 = vector.load %arg6[%c0_15, %c0_16] : memref<512x128xf32, #tpu.memory_space<vmem>>, vector<512x128xf32>
      tpu.vector_store %arg6[%c0_15, %c0_16], %17 {strides = array<i32>} : memref<512x128xf32, #tpu.memory_space<vmem>>, vector<512x128xf32>,
    } else {
    }
    return
  }
  func.func @transform_0(%arg0: i32, %arg1: i32, %arg2: i32) -> (i32, i32) {
    %c0_i32 = arith.constant 0 : i32
    return %arg0, %arg2 : i32, i32
  }
  func.func @transform_1(%arg0: i32, %arg1: i32, %arg2: i32) -> (i32, i32) {
    %c0_i32 = arith.constant 0 : i32
    return %arg2, %arg1 : i32, i32
  }
  func.func @transform_2(%arg0: i32, %arg1: i32, %arg2: i32) -> (i32, i32) {
    %c0_i32 = arith.constant 0 : i32
    %c0_i32_0 = arith.constant 0 : i32
    return %c0_i32, %arg1 : i32, i32
  }
  func.func @transform_3(%arg0: i32, %arg1: i32, %arg2: i32) -> (i32, i32) {
    %c0_i32 = arith.constant 0 : i32
    return %arg0, %arg1 : i32, i32
  }
}

</mosaic_0001>

<bundles_post_ra>
// kernel: tpu_custom_call.1
= control target key start
LH: loop header
LB: loop body
LE: loop exit
PB: predicated region body
PF: predicated region fallthrough
CT: control target
= control target key end

     0   :  { %8 = vsyncpa [#allocation3], 0  ;;  %s1495_s0 = inlined_call_operand.hbm [shape: bf16[512,128], index: 0, kind: input, shape index: {}]   ;;  %s1496_s1 = inlined_call_operand.hbm [shape: bf16[128,128], index: 1, kind: input, shape index: {}]   ;;  %s1497_s2 = inlined_call_operand.vmem [shape: f32[1,128], index: 2, kind: input, shape index: {}]   ;;  %s1498_s3 = inlined_call_operand.hbm [shape: f32[512,128], index: 3, kind: output, shape index: {}]  }
   0x1   :  { %9 = vsyncpa [#allocation6], 0 }
   0x2   :  { %10 = vsyncpa [#allocation4], 0  ;;  %s15_s14 = sshll.u32 %s1495_s0, 4  ;;  %s1390_s15 = smov [#allocation2]   ;;  %s16_s14 = int_to_ptr.hbm [resolvable:$true] %s15_s14 }
   0x3   :  { %s17_s16 = sshll.u32 %s1390_s15, 4  ;;  %s28_s19 = sshll.u32 %s1496_s1, 4  ;;  %s18_s16 = int_to_ptr.vmem [resolvable:$true] %s17_s16  ;;  %s29_s19 = int_to_ptr.hbm [resolvable:$true] %s28_s19 }
   0x4   :  { %s1391_s20 = smov 64   ;;  %s1392_s21 = smov 4  }
   0x5   :  { %23 = dma.hbm_to_vmem [thread:$0]  %s16_s14, 4096, %s18_s16, [#allocation3], %s1391_s20, %s1391_s20, %s1392_s21  }
   0x6   :  { %s1393_s22 = smov [#allocation5]  }
   0x7   :  { %s30_s23 = sshll.u32 %s1393_s22, 4  ;;  %s31_s23 = int_to_ptr.vmem [resolvable:$true] %s30_s23 }
   0x8   :  { %36 = dma.hbm_to_vmem [thread:$0]  %s29_s19, 1024, %s31_s23, [#allocation6], %s1391_s20, %s1391_s20, %s1392_s21  }
   0x9   :  { %1384 = dma.done.wait [#allocation3], 4096  }
   0xa   :  { %1385 = vsyncadd [#allocation3], 4294963200 }
   0xb   :  { %1386 = dma.done.wait [#allocation6], 1024  }
   0xc   :  { %1387 = vsyncadd [#allocation6], 4294966272  ;;  %v1278_v0 = vld [vmem:[#allocation5 + $0x38] sm:$0xff]  ;;  %v1277_v1 = vld [vmem:[#allocation5 + $0x30] sm:$0xff]  ;;  %s1065_s27 = sshll.u32 %s1498_s3, 4  ;;  %s1395_s28 = smov 128   ;;  %s1066_s27 = int_to_ptr.hbm [resolvable:$true] %s1065_s27 }
   0xd   :  { %499 = vmatpush.bf16.msra.mxu0 %v1278_v0  ;;  %1279 = vmatpush.bf16.msra.mxu1 %v1278_v0  ;;  %v1276_v2 = vld [vmem:[#allocation5 + $0x28] sm:$0xff]  ;;  %v1275_v3 = vld [vmem:[#allocation5 + $0x20] sm:$0xff]  ;;  %v1274_v4 = vld [vmem:[#allocation5 + $0x18] sm:$0xff]  ;;  %s1396_s29 = smov 8  }
   0xe   :  { %1280 = vmatpush.bf16.msra.mxu2 %v1278_v0  ;;  %1281 = vmatpush.bf16.msra.mxu3 %v1278_v0  ;;  %v1273_v5 = vld [vmem:[#allocation5 + $0x10] sm:$0xff]  ;;  %v1272_v6 = vld [vmem:[#allocation5 + $0x8] sm:$0xff]  ;;  %v1271_v7 = vld [vmem:[#allocation5] sm:$0xff] }
   0xf   :  { %v1239_v8 = vld [vmem:[#allocation2] sm:$0xff]  ;;  %v1240_v12 = vld [vmem:[#allocation2 + $0x8] sm:$0xff]  ;;  %v1241_v16 = vld [vmem:[#allocation2 + $0x10] sm:$0xff] }
  0x10   :  { %v1247_v9 = vld [vmem:[#allocation2 + $0x40] sm:$0xff]  ;;  %v1248_v13 = vld [vmem:[#allocation2 + $0x48] sm:$0xff]  ;;  %v1249_v17 = vld [vmem:[#allocation2 + $0x50] sm:$0xff] }
  0x11   :  { %500 = vmatpush.bf16.msra.mxu0 %v1277_v1  ;;  %1282 = vmatpush.bf16.msra.mxu1 %v1277_v1  ;;  %v1255_v10 = vld [vmem:[#allocation2 + $0x80] sm:$0xff]  ;;  %v1256_v14 = vld [vmem:[#allocation2 + $0x88] sm:$0xff]  ;;  %v1257_v18 = vld [vmem:[#allocation2 + $0x90] sm:$0xff] }
  0x12   :  { %1283 = vmatpush.bf16.msra.mxu2 %v1277_v1  ;;  %1284 = vmatpush.bf16.msra.mxu3 %v1277_v1  ;;  %v1263_v11 = vld [vmem:[#allocation2 + $0xc0] sm:$0xff]  ;;  %v1264_v15 = vld [vmem:[#allocation2 + $0xc8] sm:$0xff]  ;;  %v1265_v19 = vld [vmem:[#allocation2 + $0xd0] sm:$0xff] }
  0x13   :  { %v1242_v20 = vld [vmem:[#allocation2 + $0x18] sm:$0xff]  ;;  %v1243_v24 = vld [vmem:[#allocation2 + $0x20] sm:$0xff]  ;;  %v1244_v28 = vld [vmem:[#allocation2 + $0x28] sm:$0xff] }
  0x14   :  { %v1250_v21 = vld [vmem:[#allocation2 + $0x58] sm:$0xff]  ;;  %v1251_v25 = vld [vmem:[#allocation2 + $0x60] sm:$0xff]  ;;  %v1252_v29 = vld [vmem:[#allocation2 + $0x68] sm:$0xff] }
  0x15   :  { %501 = vmatpush.bf16.msra.mxu0 %v1276_v2  ;;  %1285 = vmatpush.bf16.msra.mxu1 %v1276_v2  ;;  %v1258_v22 = vld [vmem:[#allocation2 + $0x98] sm:$0xff]  ;;  %v1259_v26 = vld [vmem:[#allocation2 + $0xa0] sm:$0xff]  ;;  %v1260_v30 = vld [vmem:[#allocation2 + $0xa8] sm:$0xff] }
  0x16   :  { %1286 = vmatpush.bf16.msra.mxu2 %v1276_v2  ;;  %1287 = vmatpush.bf16.msra.mxu3 %v1276_v2  ;;  %v1266_v23 = vld [vmem:[#allocation2 + $0xd8] sm:$0xff]  ;;  %v1267_v27 = vld [vmem:[#allocation2 + $0xe0] sm:$0xff]  ;;  %v1268_v31 = vld [vmem:[#allocation2 + $0xe8] sm:$0xff] }
  0x17   :  { %v1245_v32 = vld [vmem:[#allocation2 + $0x30] sm:$0xff]  ;;  %v1246_v36 = vld [vmem:[#allocation2 + $0x38] sm:$0xff]  ;;  %v1426_v40 = vld [vmem:[%s1497_s2] ss:$0 sm:$0xff]  ;;  %s1394_s2 = smov [#allocation7]  }
  0x18   :  { %v1253_v33 = vld [vmem:[#allocation2 + $0x70] sm:$0xff]  ;;  %v1254_v37 = vld [vmem:[#allocation2 + $0x78] sm:$0xff]  ;;  %s1063_s24 = sshll.u32 %s1394_s2, 4  ;;  %s1064_s24 = int_to_ptr.vmem [resolvable:$true] %s1063_s24 }
  0x19   :  { %502 = vmatpush.bf16.msra.mxu0 %v1275_v3  ;;  %1288 = vmatpush.bf16.msra.mxu1 %v1275_v3  ;;  %v1261_v34 = vld [vmem:[#allocation2 + $0xb0] sm:$0xff]  ;;  %v1262_v38 = vld [vmem:[#allocation2 + $0xb8] sm:$0xff] }
  0x1a   :  { %1289 = vmatpush.bf16.msra.mxu2 %v1275_v3  ;;  %1290 = vmatpush.bf16.msra.mxu3 %v1275_v3  ;;  %v1269_v35 = vld [vmem:[#allocation2 + $0xf0] sm:$0xff]  ;;  %v1270_v39 = vld [vmem:[#allocation2 + $0xf8] sm:$0xff] }
  0x1d   :  { %503 = vmatpush.bf16.msra.mxu0 %v1274_v4  ;;  %1291 = vmatpush.bf16.msra.mxu1 %v1274_v4 }
  0x1e   :  { %1292 = vmatpush.bf16.msra.mxu2 %v1274_v4  ;;  %1293 = vmatpush.bf16.msra.mxu3 %v1274_v4 }
  0x21   :  { %504 = vmatpush.bf16.msra.mxu0 %v1273_v5  ;;  %1294 = vmatpush.bf16.msra.mxu1 %v1273_v5 }
  0x22   :  { %1295 = vmatpush.bf16.msra.mxu2 %v1273_v5  ;;  %1296 = vmatpush.bf16.msra.mxu3 %v1273_v5 }
  0x25   :  { %505 = vmatpush.bf16.msra.mxu0 %v1272_v6  ;;  %1297 = vmatpush.bf16.msra.mxu1 %v1272_v6 }
  0x26   :  { %1298 = vmatpush.bf16.msra.mxu2 %v1272_v6  ;;  %1299 = vmatpush.bf16.msra.mxu3 %v1272_v6 }
  0x29   :  { %506 = vmatpush.bf16.msra.mxu0 %v1271_v7  ;;  %1300 = vmatpush.bf16.msra.mxu1 %v1271_v7 }
  0x2a   :  { %1301 = vmatpush.bf16.msra.mxu2 %v1271_v7  ;;  %1302 = vmatpush.bf16.msra.mxu3 %v1271_v7 }
  0x2c   :  { %507 = vmatmul.bf16.vlgmr.msra.gmra.mxu0 %v1239_v8  ;;  %547 = vmatmul.bf16.vlgmr.msra.gmra.mxu1 %v1247_v9 }
  0x2d   :  { %587 = vmatmul.bf16.vlgmr.msra.gmra.mxu2 %v1255_v10  ;;  %627 = vmatmul.bf16.vlgmr.msra.gmra.mxu3 %v1263_v11 }
  0x3c   :  { %512 = vmatmul.bf16.gmra.mxu0 %v1240_v12  ;;  %552 = vmatmul.bf16.gmra.mxu1 %v1248_v13 }
  0x3d   :  { %592 = vmatmul.bf16.gmra.mxu2 %v1256_v14  ;;  %632 = vmatmul.bf16.gmra.mxu3 %v1264_v15 }
  0x4c   :  { %517 = vmatmul.bf16.gmra.mxu0 %v1241_v16  ;;  %557 = vmatmul.bf16.gmra.mxu1 %v1249_v17 }
  0x4d   :  { %597 = vmatmul.bf16.gmra.mxu2 %v1257_v18  ;;  %637 = vmatmul.bf16.gmra.mxu3 %v1265_v19 }
  0x5c   :  { %522 = vmatmul.bf16.gmra.mxu0 %v1242_v20  ;;  %562 = vmatmul.bf16.gmra.mxu1 %v1250_v21 }
  0x5d   :  { %602 = vmatmul.bf16.gmra.mxu2 %v1258_v22  ;;  %642 = vmatmul.bf16.gmra.mxu3 %v1266_v23 }
  0x6c   :  { %527 = vmatmul.bf16.gmra.mxu0 %v1243_v24  ;;  %567 = vmatmul.bf16.gmra.mxu1 %v1251_v25 }
  0x6d   :  { %607 = vmatmul.bf16.gmra.mxu2 %v1259_v26  ;;  %647 = vmatmul.bf16.gmra.mxu3 %v1267_v27 }
  0x7c   :  { %532 = vmatmul.bf16.gmra.mxu0 %v1244_v28  ;;  %572 = vmatmul.bf16.gmra.mxu1 %v1252_v29 }
  0x7d   :  { %612 = vmatmul.bf16.gmra.mxu2 %v1260_v30  ;;  %652 = vmatmul.bf16.gmra.mxu3 %v1268_v31 }
  0x8c   :  { %537 = vmatmul.bf16.gmra.mxu0 %v1245_v32  ;;  %577 = vmatmul.bf16.gmra.mxu1 %v1253_v33 }
  0x8d   :  { %617 = vmatmul.bf16.gmra.mxu2 %v1261_v34  ;;  %657 = vmatmul.bf16.gmra.mxu3 %v1269_v35 }
  0x9c   :  { %542 = vmatmul.bf16.gmra.mxu0 %v1246_v36  ;;  %582 = vmatmul.bf16.gmra.mxu1 %v1254_v37 }
  0x9d   :  { %622 = vmatmul.bf16.gmra.mxu2 %v1262_v38  ;;  %662 = vmatmul.bf16.gmra.mxu3 %v1270_v39 }
  0xa9   :  { %v508_v41 = vpop.f32.mrf.mxu0  ;;  %v548_v42 = vpop.f32.mrf.mxu1 }
  0xaa   :  { %v867_v43 = vadd.f32 %v1426_v40, %v508_v41  ;;  %v883_v44 = vadd.f32 %v1426_v40, %v548_v42 }
  0xac   :  { %v931_v45 = vmax.f32 %v867_v43, 0.0  ;;  %v947_v46 = vmax.f32 %v883_v44, 0.0 }
  0xae   :  { %995 = vst [vmem:[#allocation7] sm:$0xff] %v931_v45 }
  0xaf   :  { %1011 = vst [vmem:[#allocation7 + $0x80] sm:$0xff] %v947_v46 }
  0xb0   :  { %v588_v47 = vpop.f32.mrf.mxu2  ;;  %v628_v48 = vpop.f32.mrf.mxu3 }
  0xb1   :  { %v510_v49 = vpop.f32.mrf.mxu0  ;;  %v550_v50 = vpop.f32.mrf.mxu1  ;;  %v899_v51 = vadd.f32 %v1426_v40, %v588_v47  ;;  %v915_v52 = vadd.f32 %v1426_v40, %v628_v48 }
  0xb2   :  { %v868_v53 = vadd.f32 %v1426_v40, %v510_v49  ;;  %v884_v54 = vadd.f32 %v1426_v40, %v550_v50 }
  0xb3   :  { %v963_v55 = vmax.f32 %v899_v51, 0.0  ;;  %v979_v56 = vmax.f32 %v915_v52, 0.0 }
  0xb4   :  { %v932_v57 = vmax.f32 %v868_v53, 0.0  ;;  %v948_v58 = vmax.f32 %v884_v54, 0.0 }
  0xb5   :  { %1027 = vst [vmem:[#allocation7 + $0x100] sm:$0xff] %v963_v55 }
  0xb6   :  { %1043 = vst [vmem:[#allocation7 + $0x180] sm:$0xff] %v979_v56 }
  0xb7   :  { %996 = vst [vmem:[#allocation7 + $0x8] sm:$0xff] %v932_v57 }
  0xb8   :  { %v590_v59 = vpop.f32.mrf.mxu2  ;;  %v630_v60 = vpop.f32.mrf.mxu3  ;;  %1012 = vst [vmem:[#allocation7 + $0x88] sm:$0xff] %v948_v58 }
  0xb9   :  { %v513_v61 = vpop.f32.mrf.mxu0  ;;  %v553_v62 = vpop.f32.mrf.mxu1  ;;  %v900_v63 = vadd.f32 %v1426_v40, %v590_v59  ;;  %v916_v0 = vadd.f32 %v1426_v40, %v630_v60 }
  0xba   :  { %v869_v1 = vadd.f32 %v1426_v40, %v513_v61  ;;  %v885_v2 = vadd.f32 %v1426_v40, %v553_v62 }
  0xbb   :  { %v964_v3 = vmax.f32 %v900_v63, 0.0  ;;  %v980_v4 = vmax.f32 %v916_v0, 0.0 }
  0xbc   :  { %v933_v5 = vmax.f32 %v869_v1, 0.0  ;;  %v949_v6 = vmax.f32 %v885_v2, 0.0 }
  0xbd   :  { %1028 = vst [vmem:[#allocation7 + $0x108] sm:$0xff] %v964_v3 }
  0xbe   :  { %1044 = vst [vmem:[#allocation7 + $0x188] sm:$0xff] %v980_v4 }
  0xbf   :  { %997 = vst [vmem:[#allocation7 + $0x10] sm:$0xff] %v933_v5 }
  0xc0   :  { %v593_v7 = vpop.f32.mrf.mxu2  ;;  %v633_v8 = vpop.f32.mrf.mxu3  ;;  %1013 = vst [vmem:[#allocation7 + $0x90] sm:$0xff] %v949_v6 }
  0xc1   :  { %v515_v9 = vpop.f32.mrf.mxu0  ;;  %v555_v10 = vpop.f32.mrf.mxu1  ;;  %v901_v11 = vadd.f32 %v1426_v40, %v593_v7  ;;  %v917_v12 = vadd.f32 %v1426_v40, %v633_v8 }
  0xc2   :  { %v870_v13 = vadd.f32 %v1426_v40, %v515_v9  ;;  %v886_v14 = vadd.f32 %v1426_v40, %v555_v10 }
  0xc3   :  { %v965_v15 = vmax.f32 %v901_v11, 0.0  ;;  %v981_v16 = vmax.f32 %v917_v12, 0.0 }
  0xc4   :  { %v934_v17 = vmax.f32 %v870_v13, 0.0  ;;  %v950_v18 = vmax.f32 %v886_v14, 0.0 }
  0xc5   :  { %1029 = vst [vmem:[#allocation7 + $0x110] sm:$0xff] %v965_v15 }
  0xc6   :  { %1045 = vst [vmem:[#allocation7 + $0x190] sm:$0xff] %v981_v16 }
  0xc7   :  { %998 = vst [vmem:[#allocation7 + $0x18] sm:$0xff] %v934_v17 }
  0xc8   :  { %v595_v19 = vpop.f32.mrf.mxu2  ;;  %v635_v20 = vpop.f32.mrf.mxu3  ;;  %1014 = vst [vmem:[#allocation7 + $0x98] sm:$0xff] %v950_v18 }
  0xc9   :  { %v518_v21 = vpop.f32.mrf.mxu0  ;;  %v558_v22 = vpop.f32.mrf.mxu1  ;;  %v902_v23 = vadd.f32 %v1426_v40, %v595_v19  ;;  %v918_v24 = vadd.f32 %v1426_v40, %v635_v20 }
  0xca   :  { %v871_v25 = vadd.f32 %v1426_v40, %v518_v21  ;;  %v887_v26 = vadd.f32 %v1426_v40, %v558_v22 }
  0xcb   :  { %v966_v27 = vmax.f32 %v902_v23, 0.0  ;;  %v982_v28 = vmax.f32 %v918_v24, 0.0 }
  0xcc   :  { %v935_v29 = vmax.f32 %v871_v25, 0.0  ;;  %v951_v30 = vmax.f32 %v887_v26, 0.0 }
  0xcd   :  { %1030 = vst [vmem:[#allocation7 + $0x118] sm:$0xff] %v966_v27 }
  0xce   :  { %1046 = vst [vmem:[#allocation7 + $0x198] sm:$0xff] %v982_v28 }
  0xcf   :  { %999 = vst [vmem:[#allocation7 + $0x20] sm:$0xff] %v935_v29 }
  0xd0   :  { %v598_v31 = vpop.f32.mrf.mxu2  ;;  %v638_v32 = vpop.f32.mrf.mxu3  ;;  %1015 = vst [vmem:[#allocation7 + $0xa0] sm:$0xff] %v951_v30 }
  0xd1   :  { %v520_v33 = vpop.f32.mrf.mxu0  ;;  %v560_v34 = vpop.f32.mrf.mxu1  ;;  %v903_v35 = vadd.f32 %v1426_v40, %v598_v31  ;;  %v919_v36 = vadd.f32 %v1426_v40, %v638_v32 }
  0xd2   :  { %v872_v37 = vadd.f32 %v1426_v40, %v520_v33  ;;  %v888_v38 = vadd.f32 %v1426_v40, %v560_v34 }
  0xd3   :  { %v967_v39 = vmax.f32 %v903_v35, 0.0  ;;  %v983_v41 = vmax.f32 %v919_v36, 0.0 }
  0xd4   :  { %v936_v42 = vmax.f32 %v872_v37, 0.0  ;;  %v952_v43 = vmax.f32 %v888_v38, 0.0 }
  0xd5   :  { %1031 = vst [vmem:[#allocation7 + $0x120] sm:$0xff] %v967_v39 }
  0xd6   :  { %1047 = vst [vmem:[#allocation7 + $0x1a0] sm:$0xff] %v983_v41 }
  0xd7   :  { %1000 = vst [vmem:[#allocation7 + $0x28] sm:$0xff] %v936_v42 }
  0xd8   :  { %v600_v44 = vpop.f32.mrf.mxu2  ;;  %v640_v45 = vpop.f32.mrf.mxu3  ;;  %1016 = vst [vmem:[#allocation7 + $0xa8] sm:$0xff] %v952_v43 }
  0xd9   :  { %v523_v46 = vpop.f32.mrf.mxu0  ;;  %v563_v47 = vpop.f32.mrf.mxu1  ;;  %v904_v48 = vadd.f32 %v1426_v40, %v600_v44  ;;  %v920_v49 = vadd.f32 %v1426_v40, %v640_v45 }
  0xda   :  { %v873_v50 = vadd.f32 %v1426_v40, %v523_v46  ;;  %v889_v51 = vadd.f32 %v1426_v40, %v563_v47 }
  0xdb   :  { %v968_v52 = vmax.f32 %v904_v48, 0.0  ;;  %v984_v53 = vmax.f32 %v920_v49, 0.0 }
  0xdc   :  { %v937_v54 = vmax.f32 %v873_v50, 0.0  ;;  %v953_v55 = vmax.f32 %v889_v51, 0.0 }
  0xdd   :  { %1032 = vst [vmem:[#allocation7 + $0x128] sm:$0xff] %v968_v52 }
  0xde   :  { %1048 = vst [vmem:[#allocation7 + $0x1a8] sm:$0xff] %v984_v53 }
  0xdf   :  { %1001 = vst [vmem:[#allocation7 + $0x30] sm:$0xff] %v937_v54 }
  0xe0   :  { %v603_v56 = vpop.f32.mrf.mxu2  ;;  %v643_v57 = vpop.f32.mrf.mxu3  ;;  %1017 = vst [vmem:[#allocation7 + $0xb0] sm:$0xff] %v953_v55 }
  0xe1   :  { %v525_v58 = vpop.f32.mrf.mxu0  ;;  %v565_v59 = vpop.f32.mrf.mxu1  ;;  %v905_v60 = vadd.f32 %v1426_v40, %v603_v56  ;;  %v921_v61 = vadd.f32 %v1426_v40, %v643_v57 }
  0xe2   :  { %v874_v62 = vadd.f32 %v1426_v40, %v525_v58  ;;  %v890_v63 = vadd.f32 %v1426_v40, %v565_v59 }
  0xe3   :  { %v969_v0 = vmax.f32 %v905_v60, 0.0  ;;  %v985_v1 = vmax.f32 %v921_v61, 0.0 }
  0xe4   :  { %v938_v2 = vmax.f32 %v874_v62, 0.0  ;;  %v954_v3 = vmax.f32 %v890_v63, 0.0 }
  0xe5   :  { %1033 = vst [vmem:[#allocation7 + $0x130] sm:$0xff] %v969_v0 }
  0xe6   :  { %1049 = vst [vmem:[#allocation7 + $0x1b0] sm:$0xff] %v985_v1 }
  0xe7   :  { %1002 = vst [vmem:[#allocation7 + $0x38] sm:$0xff] %v938_v2 }
  0xe8   :  { %v605_v4 = vpop.f32.mrf.mxu2  ;;  %v645_v5 = vpop.f32.mrf.mxu3  ;;  %1018 = vst [vmem:[#allocation7 + $0xb8] sm:$0xff] %v954_v3 }
  0xe9   :  { %v528_v6 = vpop.f32.mrf.mxu0  ;;  %v568_v7 = vpop.f32.mrf.mxu1  ;;  %v906_v8 = vadd.f32 %v1426_v40, %v605_v4  ;;  %v922_v9 = vadd.f32 %v1426_v40, %v645_v5 }
  0xea   :  { %v875_v10 = vadd.f32 %v1426_v40, %v528_v6  ;;  %v891_v11 = vadd.f32 %v1426_v40, %v568_v7 }
  0xeb   :  { %v970_v12 = vmax.f32 %v906_v8, 0.0  ;;  %v986_v13 = vmax.f32 %v922_v9, 0.0 }
  0xec   :  { %v939_v14 = vmax.f32 %v875_v10, 0.0  ;;  %v955_v15 = vmax.f32 %v891_v11, 0.0 }
  0xed   :  { %1034 = vst [vmem:[#allocation7 + $0x138] sm:$0xff] %v970_v12 }
  0xee   :  { %1050 = vst [vmem:[#allocation7 + $0x1b8] sm:$0xff] %v986_v13 }
  0xef   :  { %1003 = vst [vmem:[#allocation7 + $0x40] sm:$0xff] %v939_v14 }
  0xf0   :  { %v608_v16 = vpop.f32.mrf.mxu2  ;;  %v648_v17 = vpop.f32.mrf.mxu3  ;;  %1019 = vst [vmem:[#allocation7 + $0xc0] sm:$0xff] %v955_v15 }
  0xf1   :  { %v530_v18 = vpop.f32.mrf.mxu0  ;;  %v570_v19 = vpop.f32.mrf.mxu1  ;;  %v907_v20 = vadd.f32 %v1426_v40, %v608_v16  ;;  %v923_v21 = vadd.f32 %v1426_v40, %v648_v17 }
  0xf2   :  { %v876_v22 = vadd.f32 %v1426_v40, %v530_v18  ;;  %v892_v23 = vadd.f32 %v1426_v40, %v570_v19 }
  0xf3   :  { %v971_v24 = vmax.f32 %v907_v20, 0.0  ;;  %v987_v25 = vmax.f32 %v923_v21, 0.0 }
  0xf4   :  { %v940_v26 = vmax.f32 %v876_v22, 0.0  ;;  %v956_v27 = vmax.f32 %v892_v23, 0.0 }
  0xf5   :  { %1035 = vst [vmem:[#allocation7 + $0x140] sm:$0xff] %v971_v24 }
  0xf6   :  { %1051 = vst [vmem:[#allocation7 + $0x1c0] sm:$0xff] %v987_v25 }
  0xf7   :  { %1004 = vst [vmem:[#allocation7 + $0x48] sm:$0xff] %v940_v26 }
  0xf8   :  { %v610_v28 = vpop.f32.mrf.mxu2  ;;  %v650_v29 = vpop.f32.mrf.mxu3  ;;  %1020 = vst [vmem:[#allocation7 + $0xc8] sm:$0xff] %v956_v27 }
  0xf9   :  { %v533_v30 = vpop.f32.mrf.mxu0  ;;  %v573_v31 = vpop.f32.mrf.mxu1  ;;  %v908_v32 = vadd.f32 %v1426_v40, %v610_v28  ;;  %v924_v33 = vadd.f32 %v1426_v40, %v650_v29 }
  0xfa   :  { %v877_v34 = vadd.f32 %v1426_v40, %v533_v30  ;;  %v893_v35 = vadd.f32 %v1426_v40, %v573_v31 }
  0xfb   :  { %v972_v36 = vmax.f32 %v908_v32, 0.0  ;;  %v988_v37 = vmax.f32 %v924_v33, 0.0 }
  0xfc   :  { %v941_v38 = vmax.f32 %v877_v34, 0.0  ;;  %v957_v39 = vmax.f32 %v893_v35, 0.0 }
  0xfd   :  { %1036 = vst [vmem:[#allocation7 + $0x148] sm:$0xff] %v972_v36 }
  0xfe   :  { %1052 = vst [vmem:[#allocation7 + $0x1c8] sm:$0xff] %v988_v37 }
  0xff   :  { %1005 = vst [vmem:[#allocation7 + $0x50] sm:$0xff] %v941_v38 }
 0x100   :  { %v613_v41 = vpop.f32.mrf.mxu2  ;;  %v653_v42 = vpop.f32.mrf.mxu3  ;;  %1021 = vst [vmem:[#allocation7 + $0xd0] sm:$0xff] %v957_v39 }
 0x101   :  { %v535_v43 = vpop.f32.mrf.mxu0  ;;  %v575_v44 = vpop.f32.mrf.mxu1  ;;  %v909_v45 = vadd.f32 %v1426_v40, %v613_v41  ;;  %v925_v46 = vadd.f32 %v1426_v40, %v653_v42 }
 0x102   :  { %v878_v47 = vadd.f32 %v1426_v40, %v535_v43  ;;  %v894_v48 = vadd.f32 %v1426_v40, %v575_v44 }
 0x103   :  { %v973_v49 = vmax.f32 %v909_v45, 0.0  ;;  %v989_v50 = vmax.f32 %v925_v46, 0.0 }
 0x104   :  { %v942_v51 = vmax.f32 %v878_v47, 0.0  ;;  %v958_v52 = vmax.f32 %v894_v48, 0.0 }
 0x105   :  { %1037 = vst [vmem:[#allocation7 + $0x150] sm:$0xff] %v973_v49 }
 0x106   :  { %1053 = vst [vmem:[#allocation7 + $0x1d0] sm:$0xff] %v989_v50 }
 0x107   :  { %1006 = vst [vmem:[#allocation7 + $0x58] sm:$0xff] %v942_v51 }
 0x108   :  { %v615_v53 = vpop.f32.mrf.mxu2  ;;  %v655_v54 = vpop.f32.mrf.mxu3  ;;  %1022 = vst [vmem:[#allocation7 + $0xd8] sm:$0xff] %v958_v52 }
 0x109   :  { %v538_v55 = vpop.f32.mrf.mxu0  ;;  %v578_v56 = vpop.f32.mrf.mxu1  ;;  %v910_v57 = vadd.f32 %v1426_v40, %v615_v53  ;;  %v926_v58 = vadd.f32 %v1426_v40, %v655_v54 }
 0x10a   :  { %v879_v59 = vadd.f32 %v1426_v40, %v538_v55  ;;  %v895_v60 = vadd.f32 %v1426_v40, %v578_v56 }
 0x10b   :  { %v974_v61 = vmax.f32 %v910_v57, 0.0  ;;  %v990_v62 = vmax.f32 %v926_v58, 0.0 }
 0x10c   :  { %v943_v63 = vmax.f32 %v879_v59, 0.0  ;;  %v959_v0 = vmax.f32 %v895_v60, 0.0 }
 0x10d   :  { %1038 = vst [vmem:[#allocation7 + $0x158] sm:$0xff] %v974_v61 }
 0x10e   :  { %1054 = vst [vmem:[#allocation7 + $0x1d8] sm:$0xff] %v990_v62 }
 0x10f   :  { %1007 = vst [vmem:[#allocation7 + $0x60] sm:$0xff] %v943_v63 }
 0x110   :  { %v618_v1 = vpop.f32.mrf.mxu2  ;;  %v658_v2 = vpop.f32.mrf.mxu3  ;;  %1023 = vst [vmem:[#allocation7 + $0xe0] sm:$0xff] %v959_v0 }
 0x111   :  { %v540_v3 = vpop.f32.mrf.mxu0  ;;  %v580_v4 = vpop.f32.mrf.mxu1  ;;  %v911_v5 = vadd.f32 %v1426_v40, %v618_v1  ;;  %v927_v6 = vadd.f32 %v1426_v40, %v658_v2 }
 0x112   :  { %v880_v7 = vadd.f32 %v1426_v40, %v540_v3  ;;  %v896_v8 = vadd.f32 %v1426_v40, %v580_v4 }
 0x113   :  { %v975_v9 = vmax.f32 %v911_v5, 0.0  ;;  %v991_v10 = vmax.f32 %v927_v6, 0.0 }
 0x114   :  { %v944_v11 = vmax.f32 %v880_v7, 0.0  ;;  %v960_v12 = vmax.f32 %v896_v8, 0.0 }
 0x115   :  { %1039 = vst [vmem:[#allocation7 + $0x160] sm:$0xff] %v975_v9 }
 0x116   :  { %1055 = vst [vmem:[#allocation7 + $0x1e0] sm:$0xff] %v991_v10 }
 0x117   :  { %1008 = vst [vmem:[#allocation7 + $0x68] sm:$0xff] %v944_v11 }
 0x118   :  { %v620_v13 = vpop.f32.mrf.mxu2  ;;  %v660_v14 = vpop.f32.mrf.mxu3  ;;  %1024 = vst [vmem:[#allocation7 + $0xe8] sm:$0xff] %v960_v12 }
 0x119   :  { %v543_v15 = vpop.f32.mrf.mxu0  ;;  %v583_v16 = vpop.f32.mrf.mxu1  ;;  %v912_v17 = vadd.f32 %v1426_v40, %v620_v13  ;;  %v928_v18 = vadd.f32 %v1426_v40, %v660_v14 }
 0x11a   :  { %v881_v19 = vadd.f32 %v1426_v40, %v543_v15  ;;  %v897_v20 = vadd.f32 %v1426_v40, %v583_v16 }
 0x11b   :  { %v976_v21 = vmax.f32 %v912_v17, 0.0  ;;  %v992_v22 = vmax.f32 %v928_v18, 0.0 }
 0x11c   :  { %v945_v23 = vmax.f32 %v881_v19, 0.0  ;;  %v961_v24 = vmax.f32 %v897_v20, 0.0 }
 0x11d   :  { %1040 = vst [vmem:[#allocation7 + $0x168] sm:$0xff] %v976_v21 }
 0x11e   :  { %1056 = vst [vmem:[#allocation7 + $0x1e8] sm:$0xff] %v992_v22 }
 0x11f   :  { %1009 = vst [vmem:[#allocation7 + $0x70] sm:$0xff] %v945_v23 }
 0x120   :  { %v623_v25 = vpop.f32.mrf.mxu2  ;;  %v663_v26 = vpop.f32.mrf.mxu3  ;;  %1025 = vst [vmem:[#allocation7 + $0xf0] sm:$0xff] %v961_v24 }
 0x121   :  { %v545_v27 = vpop.f32.mrf.mxu0  ;;  %v585_v28 = vpop.f32.mrf.mxu1  ;;  %v913_v29 = vadd.f32 %v1426_v40, %v623_v25  ;;  %v929_v30 = vadd.f32 %v1426_v40, %v663_v26 }
 0x122   :  { %v882_v31 = vadd.f32 %v1426_v40, %v545_v27  ;;  %v898_v32 = vadd.f32 %v1426_v40, %v585_v28 }
 0x123   :  { %v977_v33 = vmax.f32 %v913_v29, 0.0  ;;  %v993_v34 = vmax.f32 %v929_v30, 0.0 }
 0x124   :  { %v946_v35 = vmax.f32 %v882_v31, 0.0  ;;  %v962_v36 = vmax.f32 %v898_v32, 0.0 }
 0x125   :  { %1041 = vst [vmem:[#allocation7 + $0x170] sm:$0xff] %v977_v33 }
 0x126   :  { %1057 = vst [vmem:[#allocation7 + $0x1f0] sm:$0xff] %v993_v34 }
 0x127   :  { %1010 = vst [vmem:[#allocation7 + $0x78] sm:$0xff] %v946_v35 }
 0x128   :  { %v625_v37 = vpop.f32.mrf.mxu2  ;;  %v665_v38 = vpop.f32.mrf.mxu3  ;;  %1026 = vst [vmem:[#allocation7 + $0xf8] sm:$0xff] %v962_v36 }
 0x129   :  { %v914_v39 = vadd.f32 %v1426_v40, %v625_v37  ;;  %v930_v41 = vadd.f32 %v1426_v40, %v665_v38 }
 0x12b   :  { %v978_v42 = vmax.f32 %v914_v39, 0.0  ;;  %v994_v43 = vmax.f32 %v930_v41, 0.0 }
 0x12d   :  { %1042 = vst [vmem:[#allocation7 + $0x178] sm:$0xff] %v978_v42 }
 0x12e   :  { %1058 = vst [vmem:[#allocation7 + $0x1f8] sm:$0xff] %v994_v43 }
 0x12f   :  { %1071 = dma.vmem_to_hbm [thread:$0]  %s1064_s24, 8192, %s1066_s27, [#allocation4], %s1395_s28, %s1395_s28, %s1396_s29  }
 0x130   :  { %1388 = dma.done.wait [#allocation4], 8192  }
 0x131   :  { %1389 = vsyncadd [#allocation4], 4294959104 }
 0x132   :  { %1076 = vsyncpa [#allocation3], 1 }
 0x133   :  { %1077 = vsyncpa [#allocation6], 1 }
 0x134   :  { %1078 = vsyncpa [#allocation4], 1 }

</bundles_post_ra>
